<compile_context>
chip_gen: v7x
topology: tpu7x:2x2x1
jax: 0.10.0
libtpu: 0.0.40
codegen_flags: <defaults>
</compile_context>

<pallas_src>
import jax
import jax.numpy as jnp
from jax.experimental import pallas as pl
from jax.experimental.pallas import tpu as pltpu

# ---- problem sizes (small, deterministic) ----
N = 16          # number of nodes
DIN = 8         # in_feats
F = 8           # out_feats
H = 4           # num_heads
NEG_SLOPE = 0.2


def gat_kernel(feat_ref, w_ref, bias_ref, adj_ref, out_ref):
    # Whole problem fits in VMEM; single invocation.
    feat = feat_ref[...]                                   # (N, DIN)
    w = w_ref[...]                                         # (DIN, H*F + 2H)
    mask = adj_ref[...]                                    # (N, N)  adj[dst, src]

    # One MXU matmul gives the projection AND both attention scores:
    #   proj[:, :H*F]        = h (heads contiguous along lanes)
    #   proj[:, H*F:H*F+H]   = el (source term, per head)
    #   proj[:, H*F+H:]      = er (dest term,  per head)
    proj = jnp.dot(feat, w, preferred_element_type=jnp.float32)    # (N, H*F+2H)
    hproj = proj[:, :H * F]                                        # (N, H*F)

    # Single XLU transpose for both score vectors.
    scores_t = jnp.transpose(proj[:, H * F:])                      # (2H, N)
    elT = scores_t[:H]                                             # (H, N)  el[h, src]
    erT = scores_t[H:]                                             # (H, N)  er[h, dst]

    # Head-batched edge scores: e[h, dst, src] = el[h, src] + er[h, dst]
    e = erT[:, :, None] + elT[:, None, :]                          # (H, N, N)
    # LeakyReLU (slope < 1  =>  max(x, slope*x))
    e = jnp.maximum(e, NEG_SLOPE * e)
    # Mask non-edges before softmax over src (incoming edges of each dst).
    # Self-loops guarantee a finite row max, so exp() of masked entries is 0
    # and no extra `* mask` is needed after exp.
    e = jnp.where(mask[None, :, :] > 0, e, jnp.float32(-1e30))
    e_max = jnp.max(e, axis=-1, keepdims=True)                     # (H, N, 1)
    p = jnp.exp(e - e_max)                                         # (H, N, N)
    denom = jnp.sum(p, axis=-1, keepdims=True)                     # (H, N, 1)
    # approx=False keeps the 1e-4 atol/rtol check safe (approx=True is a
    # valid EUP-slot optimization if the tolerance is relaxed).
    inv_denom = pl.reciprocal(denom, approx=False)                 # (H, N, 1)

    # Aggregation on the MXU per head (unnormalized), normalize after the
    # matmul, and emit one lane-dense (N, H*F) block.
    outs = []
    for hd in range(H):
        agg = jnp.dot(p[hd], hproj[:, hd * F:(hd + 1) * F],
                      preferred_element_type=jnp.float32)          # (N, F)
        outs.append(agg * inv_denom[hd])                           # (N, F)
    out_ref[...] = jnp.concatenate(outs, axis=-1) + bias_ref[...]  # (N, H*F)


def gat_forward(feat, w, attn_l, attn_r, bias, adj):
    # Fold the attention vectors into the projection matmul:
    #   wl[d, h] = sum_f W[d, h*F + f] * attn_l[h, f]   (likewise wr)
    w3 = w.reshape(DIN, H, F)
    wl = jnp.einsum('dhf,hf->dh', w3, attn_l)                      # (DIN, H)
    wr = jnp.einsum('dhf,hf->dh', w3, attn_r)                      # (DIN, H)
    w_aug = jnp.concatenate([w, wl, wr], axis=1)                   # (DIN, H*F + 2H)
    bias_flat = bias.reshape(1, H * F)                             # lane-dense bias

    out_flat = pl.pallas_call(
        gat_kernel,
        out_shape=jax.ShapeDtypeStruct((N, H * F), jnp.float32),
        in_specs=[
            pl.BlockSpec(memory_space=pltpu.MemorySpace.VMEM),     # feat
            pl.BlockSpec(memory_space=pltpu.MemorySpace.VMEM),     # w_aug
            pl.BlockSpec(memory_space=pltpu.MemorySpace.VMEM),     # bias_flat
            pl.BlockSpec(memory_space=pltpu.MemorySpace.VMEM),     # adj
        ],
        out_specs=pl.BlockSpec(memory_space=pltpu.MemorySpace.VMEM),
    )(feat, w_aug, bias_flat, adj)
    # free row-major reshape to the PyTorch layout (N, H, F)
    return out_flat.reshape(N, H, F)


def reference_forward(feat, w, attn_l, attn_r, bias, adj):
    h = (feat @ w).reshape(N, H, F)
    el = jnp.sum(h * attn_l[None], axis=-1)                # (N, H)
    er = jnp.sum(h * attn_r[None], axis=-1)                # (N, H)
    e = el[None, :, :] + er[:, None, :]                    # (dst, src, H)
    e = jnp.where(e >= 0, e, NEG_SLOPE * e)
    e = jnp.where(adj[:, :, None] > 0, e, -1e30)
    e = e - jnp.max(e, axis=1, keepdims=True)
    p = jnp.exp(e) * adj[:, :, None]
    a = p / jnp.sum(p, axis=1, keepdims=True)
    out = jnp.einsum('dsh,shf->dhf', a, h)
    return out + bias[None]


if __name__ == "__main__":
    key = jax.random.PRNGKey(0)
    k_feat, k_w, k_al, k_ar, k_adj = jax.random.split(key, 5)

    feat = jax.random.normal(k_feat, (N, DIN), dtype=jnp.float32)

    # Xavier-normal-ish deterministic init (gain for relu = sqrt(2))
    gain = jnp.sqrt(2.0)
    w = gain * jax.random.normal(k_w, (DIN, H * F), dtype=jnp.float32) \
        * jnp.sqrt(2.0 / (DIN + H * F))
    attn_l = gain * jax.random.normal(k_al, (H, F), dtype=jnp.float32) \
        * jnp.sqrt(2.0 / (1 + H * F))
    attn_r = gain * jax.random.normal(k_ar, (H, F), dtype=jnp.float32) \
        * jnp.sqrt(2.0 / (1 + H * F))
    bias = jnp.zeros((H, F), dtype=jnp.float32)   # torch init: constant_(bias, 0)

    # random directed adjacency (dst, src) with self-loops => no zero in-degree
    adj = (jax.random.uniform(k_adj, (N, N)) < 0.3).astype(jnp.float32)
    adj = jnp.maximum(adj, jnp.eye(N, dtype=jnp.float32))

    out = gat_forward(feat, w, attn_l, attn_r, bias, adj)
    out = jax.block_until_ready(out)

    ref = reference_forward(feat, w, attn_l, attn_r, bias, adj)
    assert out.shape == (N, H, F)
    assert jnp.allclose(out, ref, atol=1e-4, rtol=1e-4), "mismatch vs JAX reference"

    print("KERNEL_OK")
</pallas_src>

<mosaic_0001>
module attributes {stable_mosaic.version = 11 : i64} {
  func.func @gat_kernel(%arg0: memref<16x8xf32, #tpu.memory_space<vmem>>, %arg1: memref<8x40xf32, #tpu.memory_space<vmem>>, %arg2: memref<1x32xf32, #tpu.memory_space<vmem>>, %arg3: memref<16x16xf32, #tpu.memory_space<vmem>>, %arg4: memref<16x32xf32, #tpu.memory_space<vmem>>) attributes {dimension_semantics = [], scalar_prefetch = 0 : i64, scratch_operands = 0 : i64, tpu.core_type = #tpu.core_type<tc>} {
    %c0 = arith.constant 0 : index
    %c0_0 = arith.constant 0 : index
    %0 = vector.load %arg0[%c0, %c0_0] : memref<16x8xf32, #tpu.memory_space<vmem>>, vector<16x8xf32>
    %c0_1 = arith.constant 0 : index
    %c0_2 = arith.constant 0 : index
    %1 = vector.load %arg1[%c0_1, %c0_2] : memref<8x40xf32, #tpu.memory_space<vmem>>, vector<8x40xf32>
    %c0_3 = arith.constant 0 : index
    %c0_4 = arith.constant 0 : index
    %2 = vector.load %arg3[%c0_3, %c0_4] : memref<16x16xf32, #tpu.memory_space<vmem>>, vector<16x16xf32>
    %cst = arith.constant dense<0.000000e+00> : vector<16x40xf32>
    %3 = tpu.matmul %0, %1, %cst {dimension_numbers = #tpu.dot_dimension_numbers<[1], [0], [0], [1], [0, 0, 1, 1], [], []>} : vector<16x8xf32>, vector<8x40xf32>, vector<16x40xf32> -> vector<16x40xf32>
    %4 = vector.extract_strided_slice %3 {offsets = [0, 0], sizes = [16, 32], strides = [1, 1]} : vector<16x40xf32> to vector<16x32xf32>
    %5 = vector.extract_strided_slice %3 {offsets = [0, 32], sizes = [16, 8], strides = [1, 1]} : vector<16x40xf32> to vector<16x8xf32>
    %6 = tpu.transpose %5, [1, 0] : vector<16x8xf32> -> vector<8x16xf32>
    %7 = vector.extract_strided_slice %6 {offsets = [0, 0], sizes = [4, 16], strides = [1, 1]} : vector<8x16xf32> to vector<4x16xf32>
    %8 = vector.extract_strided_slice %6 {offsets = [4, 0], sizes = [4, 16], strides = [1, 1]} : vector<8x16xf32> to vector<4x16xf32>
    %9 = vector.shape_cast %8 : vector<4x16xf32> to vector<4x16x1xf32>
    %10 = vector.shape_cast %7 : vector<4x16xf32> to vector<4x1x16xf32>
    %11 = vector.broadcast %9 : vector<4x16x1xf32> to vector<4x16x16xf32>
    %12 = vector.broadcast %10 : vector<4x1x16xf32> to vector<4x16x16xf32>
    %13 = arith.addf %11, %12 : vector<4x16x16xf32>
    %cst_5 = arith.constant 2.000000e-01 : f32
    %14 = vector.broadcast %cst_5 : f32 to vector<4x16x16xf32>
    %15 = arith.mulf %14, %13 : vector<4x16x16xf32>
    %16 = arith.maximumf %13, %15 : vector<4x16x16xf32>
    %17 = vector.shape_cast %2 : vector<16x16xf32> to vector<1x16x16xf32>
    %cst_6 = arith.constant 0.000000e+00 : f32
    %18 = vector.broadcast %cst_6 : f32 to vector<1x16x16xf32>
    %19 = arith.cmpf ogt, %17, %18 : vector<1x16x16xf32>
    %cst_7 = arith.constant -1.000000e+30 : f32
    %20 = vector.shape_cast %19 : vector<1x16x16xi1> to vector<1x16x16xi1>
    %21 = vector.broadcast %20 : vector<1x16x16xi1> to vector<4x16x16xi1>
    %22 = vector.broadcast %cst_7 : f32 to vector<4x16x16xf32>
    %23 = arith.select %21, %16, %22 : vector<4x16x16xi1>, vector<4x16x16xf32>
    %cst_8 = arith.constant dense<0xFF800000> : vector<4x16xf32>
    %24 = vector.multi_reduction <maximumf>, %23, %cst_8 [2] : vector<4x16x16xf32> to vector<4x16xf32>
    %25 = vector.shape_cast %24 : vector<4x16xf32> to vector<4x16x1xf32>
    %26 = vector.broadcast %25 : vector<4x16x1xf32> to vector<4x16x16xf32>
    %27 = arith.subf %23, %26 : vector<4x16x16xf32>
    %28 = math.exp %27 : vector<4x16x16xf32>
    %cst_9 = arith.constant dense<0.000000e+00> : vector<4x16xf32>
    %29 = vector.multi_reduction <add>, %28, %cst_9 [2] : vector<4x16x16xf32> to vector<4x16xf32>
    %30 = vector.shape_cast %29 : vector<4x16xf32> to vector<4x16x1xf32>
    %31 = tpu.reciprocal %30 : vector<4x16x1xf32> -> vector<4x16x1xf32>
    %32 = vector.extract_strided_slice %28 {offsets = [0, 0, 0], sizes = [1, 16, 16], strides = [1, 1, 1]} : vector<4x16x16xf32> to vector<1x16x16xf32>
    %33 = vector.shape_cast %32 : vector<1x16x16xf32> to vector<16x16xf32>
    %34 = vector.extract_strided_slice %4 {offsets = [0, 0], sizes = [16, 8], strides = [1, 1]} : vector<16x32xf32> to vector<16x8xf32>
    %cst_10 = arith.constant dense<0.000000e+00> : vector<16x8xf32>
    %35 = tpu.matmul %33, %34, %cst_10 {dimension_numbers = #tpu.dot_dimension_numbers<[1], [0], [0], [1], [0, 0, 1, 1], [], []>} : vector<16x16xf32>, vector<16x8xf32>, vector<16x8xf32> -> vector<16x8xf32>
    %36 = vector.extract_strided_slice %31 {offsets = [0, 0, 0], sizes = [1, 16, 1], strides = [1, 1, 1]} : vector<4x16x1xf32> to vector<1x16x1xf32>
    %37 = vector.shape_cast %36 : vector<1x16x1xf32> to vector<16x1xf32>
    %38 = vector.broadcast %37 : vector<16x1xf32> to vector<16x8xf32>
    %39 = arith.mulf %35, %38 : vector<16x8xf32>
    %40 = vector.extract_strided_slice %28 {offsets = [1, 0, 0], sizes = [1, 16, 16], strides = [1, 1, 1]} : vector<4x16x16xf32> to vector<1x16x16xf32>
    %41 = vector.shape_cast %40 : vector<1x16x16xf32> to vector<16x16xf32>
    %42 = vector.extract_strided_slice %4 {offsets = [0, 8], sizes = [16, 8], strides = [1, 1]} : vector<16x32xf32> to vector<16x8xf32>
    %cst_11 = arith.constant dense<0.000000e+00> : vector<16x8xf32>
    %43 = tpu.matmul %41, %42, %cst_11 {dimension_numbers = #tpu.dot_dimension_numbers<[1], [0], [0], [1], [0, 0, 1, 1], [], []>} : vector<16x16xf32>, vector<16x8xf32>, vector<16x8xf32> -> vector<16x8xf32>
    %44 = vector.extract_strided_slice %31 {offsets = [1, 0, 0], sizes = [1, 16, 1], strides = [1, 1, 1]} : vector<4x16x1xf32> to vector<1x16x1xf32>
    %45 = vector.shape_cast %44 : vector<1x16x1xf32> to vector<16x1xf32>
    %46 = vector.broadcast %45 : vector<16x1xf32> to vector<16x8xf32>
    %47 = arith.mulf %43, %46 : vector<16x8xf32>
    %48 = vector.extract_strided_slice %28 {offsets = [2, 0, 0], sizes = [1, 16, 16], strides = [1, 1, 1]} : vector<4x16x16xf32> to vector<1x16x16xf32>
    %49 = vector.shape_cast %48 : vector<1x16x16xf32> to vector<16x16xf32>
    %50 = vector.extract_strided_slice %4 {offsets = [0, 16], sizes = [16, 8], strides = [1, 1]} : vector<16x32xf32> to vector<16x8xf32>
    %cst_12 = arith.constant dense<0.000000e+00> : vector<16x8xf32>
    %51 = tpu.matmul %49, %50, %cst_12 {dimension_numbers = #tpu.dot_dimension_numbers<[1], [0], [0], [1], [0, 0, 1, 1], [], []>} : vector<16x16xf32>, vector<16x8xf32>, vector<16x8xf32> -> vector<16x8xf32>
    %52 = vector.extract_strided_slice %31 {offsets = [2, 0, 0], sizes = [1, 16, 1], strides = [1, 1, 1]} : vector<4x16x1xf32> to vector<1x16x1xf32>
    %53 = vector.shape_cast %52 : vector<1x16x1xf32> to vector<16x1xf32>
    %54 = vector.broadcast %53 : vector<16x1xf32> to vector<16x8xf32>
    %55 = arith.mulf %51, %54 : vector<16x8xf32>
    %56 = vector.extract_strided_slice %28 {offsets = [3, 0, 0], sizes = [1, 16, 16], strides = [1, 1, 1]} : vector<4x16x16xf32> to vector<1x16x16xf32>
    %57 = vector.shape_cast %56 : vector<1x16x16xf32> to vector<16x16xf32>
    %58 = vector.extract_strided_slice %4 {offsets = [0, 24], sizes = [16, 8], strides = [1, 1]} : vector<16x32xf32> to vector<16x8xf32>
    %cst_13 = arith.constant dense<0.000000e+00> : vector<16x8xf32>
    %59 = tpu.matmul %57, %58, %cst_13 {dimension_numbers = #tpu.dot_dimension_numbers<[1], [0], [0], [1], [0, 0, 1, 1], [], []>} : vector<16x16xf32>, vector<16x8xf32>, vector<16x8xf32> -> vector<16x8xf32>
    %60 = vector.extract_strided_slice %31 {offsets = [3, 0, 0], sizes = [1, 16, 1], strides = [1, 1, 1]} : vector<4x16x1xf32> to vector<1x16x1xf32>
    %61 = vector.shape_cast %60 : vector<1x16x1xf32> to vector<16x1xf32>
    %62 = vector.broadcast %61 : vector<16x1xf32> to vector<16x8xf32>
    %63 = arith.mulf %59, %62 : vector<16x8xf32>
    %64 = tpu.concatenate %39, %47, %55, %63 in 1 : vector<16x8xf32>, vector<16x8xf32>, vector<16x8xf32>, vector<16x8xf32> -> vector<16x32xf32>
    %c0_14 = arith.constant 0 : index
    %c0_15 = arith.constant 0 : index
    %65 = vector.load %arg2[%c0_14, %c0_15] : memref<1x32xf32, #tpu.memory_space<vmem>>, vector<1x32xf32>
    %66 = vector.broadcast %65 : vector<1x32xf32> to vector<16x32xf32>
    %67 = arith.addf %64, %66 : vector<16x32xf32>
    %c0_16 = arith.constant 0 : index
    %c0_17 = arith.constant 0 : index
    %68 = vector.load %arg4[%c0_16, %c0_17] : memref<16x32xf32, #tpu.memory_space<vmem>>, vector<16x32xf32>
    tpu.vector_store %arg4[%c0_16, %c0_17], %67 {strides = array<i32>} : memref<16x32xf32, #tpu.memory_space<vmem>>, vector<16x32xf32>,
    return
  }
}

</mosaic_0001>

<bundles_post_ra>
// kernel: tpu_custom_call.1
= control target key start
LH: loop header
LB: loop body
LE: loop exit
PB: predicated region body
PF: predicated region fallthrough
CT: control target
= control target key end

     0   :  { %vm23_vm0 = vcmask 64512   ;;  %s1041_s0 = inlined_call_operand.vmem [shape: f32[16,8], index: 0, kind: input, shape index: {}]   ;;  %s1042_s1 = inlined_call_operand.vmem [shape: f32[8,40], index: 1, kind: input, shape index: {}]   ;;  %s1043_s2 = inlined_call_operand.vmem [shape: f32[1,32], index: 2, kind: input, shape index: {}]   ;;  %s1044_s3 = inlined_call_operand.vmem [shape: f32[16,16], index: 3, kind: input, shape index: {}]   ;;  %s1045_s4 = inlined_call_operand.hbm [shape: f32[16,32], index: 4, kind: output, shape index: {}]  }
   0x1   :  { %v20_v0 = vld [vmem:[%s1042_s1] sm:$0xff]  ;;  %v19_v2 = vld [vmem:[%s1041_s0 + $0x8] sm:$0xff] }
   0x2   :  { %v18_v1 = vld [vmem:[%s1041_s0] sm:$0xff]  ;;  %792 = vmatprep.subr.mxu0 %v20_v0 }
   0x3   :  { %794 = vmatprep.mubr.msk.f32.mxu0 %vm23_vm0, %v18_v1 }
   0x4   :  { %9 = vsyncpa [#allocation3], 0  ;;  %793 = vmatpush3.msra.mxu0 %v20_v0  ;;  %s923_s21 = smov 96   ;;  %v145_v9 = vlaneseq  ;;  %s924_s0 = smov 120   ;;  %v925_v20 = vmov 1966171168  }
   0x5   :  { %795 = vmatmul.mubr.msk.f32.vlgmr.msra.gmra.mrb[0].mxu0 %vm23_vm0, %v19_v2  ;;  %v191_v21 = vunpack.c.l.s4 %v925_v20  ;;  %v975_v34 = vld [vmem:[%s1044_s3 + $0x8] sm:$0xff]  ;;  %v21_v35 = vld [vmem:[%s1044_s3] sm:$0xff]  ;;  %vm272_vm2 = vcmask 130048   ;;  %s926_s3 = smov 104   ;;  %s927_s25 = smov 112   ;;  %vm731_vm4 = vcmask 195584  }
   0x6   :  { %v146_v10 = vshrl.u32 %v145_v9, 7  ;;  %vm259_vm1 = vcmp.gt.f32.partialorder %v975_v34, 0.0  ;;  %vm258_vm3 = vcmp.gt.f32.partialorder %v21_v35, 0.0  ;;  %s928_s26 = smov 8   ;;  %s929_s27 = smov 16   ;;  %vm743_vm5 = vcmask 261120  }
   0x7   :  { %v192_v22 = vunpack.c.0.s8 %v191_v21  ;;  %s930_s28 = smov 24   ;;  %s931_s5 = smov [#allocation2]  }
   0x8   :  { %v147_v11 = vsub.s32 4, %v146_v10  ;;  %v158_v14 = vsub.s32 5, %v146_v10  ;;  %v169_v16 = vsub.s32 6, %v146_v10  ;;  %v180_v18 = vsub.s32 7, %v146_v10  ;;  %s751_s6 = sshll.u32 %s931_s5, 4  ;;  %s752_s6 = int_to_ptr.vmem [resolvable:$true] %s751_s6 }
   0x9   :  { %v195_v23 = vsub.s32 %v192_v22, %v146_v10  ;;  %v216_v26 = vsub.s32 0, %v146_v10  ;;  %s899_s7 = scalar_lea.vmem %s752_s6, 256  ;;  %p904_p1 = scmp.lt.s32.totalorder %s752_s6, %s752_s6 }
   0xa   :  { %p900_p0 = scmp.ne.s32.totalorder %s752_s6, %s899_s7  ;;  %p905_p2 = scmp.lt.s32.totalorder %s899_s7, %s899_s7 }
   0xc   :  { %p906_p3 = por %p905_p2, %p904_p1 }
   0xe   :  { %p907_p4 = pnand %p906_p3, %p900_p0 }
  0xd8   :  { %v796_v3 = vpop.f32.mrb[0].mxu0 }
  0xd9   :  { %v96_v4 = vpop.f32.mrb[1].mxu0 }
  0xda   :  { %107 = vrot.lane.b32.xlu0 %v96_v4, %s923_s21  ;;  %v825_v5 = vpack.c.bf16 %v796_v3, %v96_v4  ;;  %v969_v6 = vpack.i.bf16 %v796_v3, %v96_v4 }
  0xdc   :  { %826 = vmatprep.subr.bf16.mxu1 %v825_v5 }
  0xdd   :  { %828 = vmatpush3.bf16.msra.mxu1 %v825_v5 }
  0xde   :  { %109 = vrot.lane.b32.xlu0 %v796_v3, %s923_s21 }
 0x14c   :  { %v108_v7 = vpop.permute.xlu0 %107 }
 0x14d   :  { %113 = vxpose.xlu1.b32.start [1/2] (short) (narrow) %v108_v7, 8 }
 0x150   :  { %v110_v8 = vpop.permute.xlu0 %109 }
 0x151   :  { %114 = vxpose.xlu1.b32.end [2/2] (short) (narrow) %v110_v8, 8 }
 0x1cd   :  { %v129_v12 = vpop.trf.xlu1 }
 0x1ce   :  { %v148_v13 = vrot.slane %v129_v12, %v147_v11  ;;  %v159_v15 = vrot.slane %v129_v12, %v158_v14  ;;  %v170_v17 = vrot.slane %v129_v12, %v169_v16  ;;  %v181_v19 = vrot.slane %v129_v12, %v180_v18 }
 0x1cf   :  { %v196_v24 = vrot.slane %v129_v12, %v195_v23 }
 0x1d0   :  { %154 = vbcast.lane.b32.xlu1 %v148_v13, 264  ;;  %150 = vbcast.lane.b32.xlu0 %v148_v13, 256 }
 0x1d1   :  { %v204_v25 = vrot.slane %v196_v24, %v195_v23  ;;  %v197_v27 = vcombine.high %v196_v24, %v196_v24 }
 0x1d3   :  { %v217_v28 = vrot.slane %v204_v25, %v216_v26  ;;  %v211_v31 = vrot.slane %v197_v27, %v195_v23  ;;  %v212_v49 = vcombine.high %v204_v25, %v204_v25 }
 0x1d4   :  { %853 = vrot.lane.b32.xlu1 %v969_v6, %s924_s0  ;;  %161 = vbcast.lane.b32.xlu0 %v159_v15, 256 }
 0x1d5   :  { %v221_v39 = vrot.slane %v211_v31, %v216_v26  ;;  %v225_v57 = vrot.slane %v212_v49, %v216_v26  ;;  %v213_v1 = vcombine.high %v211_v31, %v211_v31 }
 0x1d7   :  { %v229_v8 = vrot.slane %v213_v1, %v216_v26 }
 0x1d8   :  { %165 = vbcast.lane.b32.xlu0 %v159_v15, 264 }
 0x1dc   :  { %172 = vbcast.lane.b32.xlu0 %v170_v17, 256 }
 0x1e0   :  { %176 = vbcast.lane.b32.xlu0 %v170_v17, 264 }
 0x1e4   :  { %183 = vbcast.lane.b32.xlu0 %v181_v19, 256 }
 0x1e8   :  { %187 = vbcast.lane.b32.xlu0 %v181_v19, 264 }
 0x242   :  { %v155_v29 = vpop.permute.xlu1 %154  ;;  %v151_v30 = vpop.permute.xlu0 %150 }
 0x243   :  { %v235_v32 = vadd.f32 %v217_v28, %v155_v29  ;;  %v234_v33 = vadd.f32 %v217_v28, %v151_v30 }
 0x245   :  { %v243_v36 = vmul.f32 0.2, %v235_v32  ;;  %v242_v37 = vmul.f32 0.2, %v234_v33 }
 0x246   :  { %v854_v38 = vpop.permute.xlu1 %853  ;;  %v162_v40 = vpop.permute.xlu0 %161 }
 0x247   :  { %v251_v41 = vmax.f32 %v235_v32, %v243_v36  ;;  %v250_v42 = vmax.f32 %v234_v33, %v242_v37  ;;  %v856_v43 = vunpack.i.h.bf16 %v854_v38  ;;  %v855_v44 = vunpack.i.l.bf16 %v854_v38 }
 0x248   :  { %v236_v45 = vadd.f32 %v221_v39, %v162_v40 }
 0x249   :  { %v829_v46 = vpack.c.bf16 %v856_v43, %v855_v44  ;;  %v265_v47 = vsel %vm259_vm1, %v251_v41, -1e+30  ;;  %v264_v48 = vsel %vm258_vm3, %v250_v42, -1e+30 }
 0x24a   :  { %v244_v50 = vmul.f32 0.2, %v236_v45  ;;  %v166_v51 = vpop.permute.xlu0 %165  ;;  %v276_v52 = vsel %vm272_vm2, %v265_v47, -inf  ;;  %v273_v53 = vsel %vm272_vm2, %v264_v48, -inf }
 0x24b   :  { %v237_v54 = vadd.f32 %v221_v39, %v166_v51  ;;  %277 = vmax.xlane.f32.xlu1 %v276_v52  ;;  %830 = vmatprep.subr.bf16.mxu0 %v829_v46 }
 0x24c   :  { %v252_v55 = vmax.f32 %v236_v45, %v244_v50  ;;  %274 = vmax.xlane.f32.xlu0 %v273_v53  ;;  %832 = vmatpush3.bf16.msra.mxu0 %v829_v46 }
 0x24d   :  { %v245_v56 = vmul.f32 0.2, %v237_v54 }
 0x24e   :  { %v173_v58 = vpop.permute.xlu0 %172  ;;  %v266_v59 = vsel %vm258_vm3, %v252_v55, -1e+30 }
 0x24f   :  { %v253_v60 = vmax.f32 %v237_v54, %v245_v56  ;;  %v238_v61 = vadd.f32 %v225_v57, %v173_v58  ;;  %v279_v62 = vsel %vm272_vm2, %v266_v59, -inf }
 0x250   :  { %280 = vmax.xlane.f32.xlu0 %v279_v62 }
 0x251   :  { %v246_v63 = vmul.f32 0.2, %v238_v61  ;;  %v267_v0 = vsel %vm259_vm1, %v253_v60, -1e+30 }
 0x252   :  { %v177_v2 = vpop.permute.xlu0 %176  ;;  %v282_v3 = vsel %vm272_vm2, %v267_v0, -inf }
 0x253   :  { %v254_v4 = vmax.f32 %v238_v61, %v246_v63  ;;  %v239_v5 = vadd.f32 %v225_v57, %v177_v2 }
 0x254   :  { %283 = vmax.xlane.f32.xlu0 %v282_v3 }
 0x255   :  { %v247_v7 = vmul.f32 0.2, %v239_v5  ;;  %v268_v9 = vsel %vm258_vm3, %v254_v4, -1e+30 }
 0x256   :  { %v184_v10 = vpop.permute.xlu0 %183  ;;  %v285_v11 = vsel %vm272_vm2, %v268_v9, -inf }
 0x257   :  { %v255_v12 = vmax.f32 %v239_v5, %v247_v7  ;;  %v240_v13 = vadd.f32 %v229_v8, %v184_v10  ;;  %286 = vmax.xlane.f32.xlu1 %v285_v11 }
 0x259   :  { %v248_v14 = vmul.f32 0.2, %v240_v13  ;;  %v269_v15 = vsel %vm259_vm1, %v255_v12, -1e+30 }
 0x25a   :  { %v188_v16 = vpop.permute.xlu0 %187  ;;  %v288_v17 = vsel %vm272_vm2, %v269_v15, -inf }
 0x25b   :  { %v256_v18 = vmax.f32 %v240_v13, %v248_v14  ;;  %v241_v19 = vadd.f32 %v229_v8, %v188_v16  ;;  %289 = vmax.xlane.f32.xlu0 %v288_v17 }
 0x25d   :  { %v249_v20 = vmul.f32 0.2, %v241_v19  ;;  %v270_v21 = vsel %vm258_vm3, %v256_v18, -1e+30 }
 0x25e   :  { %v291_v22 = vsel %vm272_vm2, %v270_v21, -inf }
 0x25f   :  { %v257_v23 = vmax.f32 %v241_v19, %v249_v20  ;;  %292 = vmax.xlane.f32.xlu1 %v291_v22 }
 0x261   :  { %v271_v24 = vsel %vm259_vm1, %v257_v23, -1e+30 }
 0x262   :  { %v294_v25 = vsel %vm272_vm2, %v271_v24, -inf }
 0x263   :  { %295 = vmax.xlane.f32.xlu0 %v294_v25 }
 0x270   :  { %863 = vrot.lane.b32.xlu1 %v969_v6, %s926_s3 }
 0x279   :  { %858 = vrot.lane.b32.xlu0 %v969_v6, %s927_s25 }
 0x2d8   :  { %v278_v26 = vpop.xlane.xlu1 %277 }
 0x2d9   :  { %v298_v27 = vsub.f32 %v265_v47, %v278_v26  ;;  %v275_v28 = vpop.xlane.xlu0 %274 }
 0x2da   :  { %v297_v29 = vsub.f32 %v264_v48, %v275_v28 }
 0x2db   :  { %v307_v30 = vmul.f32 1.442695, %v298_v27 }
 0x2dc   :  { %v305_v31 = vmul.f32 1.442695, %v297_v29 }
 0x2dd   :  { %867 = vpow2.f32 %v307_v30  ;;  %v281_v32 = vpop.xlane.xlu0 %280 }
 0x2de   :  { %869 = vpow2.f32 %v305_v31  ;;  %v299_v33 = vsub.f32 %v266_v59, %v281_v32 }
 0x2e0   :  { %v309_v34 = vmul.f32 1.442695, %v299_v33 }
 0x2e1   :  { %v284_v35 = vpop.xlane.xlu0 %283 }
 0x2e2   :  { %871 = vpow2.f32 %v309_v34  ;;  %v300_v36 = vsub.f32 %v267_v0, %v284_v35 }
 0x2e4   :  { %v311_v37 = vmul.f32 1.442695, %v300_v36  ;;  %v287_v38 = vpop.xlane.xlu1 %286 }
 0x2e5   :  { %v301_v39 = vsub.f32 %v268_v9, %v287_v38 }
 0x2e6   :  { %873 = vpow2.f32 %v311_v37 }
 0x2e7   :  { %v868_v40 = vpop.eup %867  ;;  %v313_v6 = vmul.f32 1.442695, %v301_v39 }
 0x2e8   :  { %v870_v41 = vpop.eup %869  ;;  %v290_v42 = vpop.xlane.xlu0 %289  ;;  %v324_v9 = vsel %vm272_vm2, %v868_v40, 0.0 }
 0x2e9   :  { %875 = vpow2.f32 %v313_v6  ;;  %801 = vmatprep.mubr.msk.f32.mxu1 %vm272_vm2, %v870_v41  ;;  %v302_v43 = vsub.f32 %v269_v15, %v290_v42  ;;  %v321_v7 = vsel %vm272_vm2, %v870_v41, 0.0 }
 0x2ea   :  { %802 = vmatmul.mubr.msk.f32.vlgmr.msra.gmra.mrb[0].mxu1 %vm272_vm2, %v868_v40 }
 0x2eb   :  { %v315_v44 = vmul.f32 1.442695, %v302_v43 }
 0x2ec   :  { %v872_v45 = vpop.eup %871  ;;  %v293_v46 = vpop.xlane.xlu1 %292 }
 0x2ed   :  { %877 = vpow2.f32 %v315_v44  ;;  %v303_v47 = vsub.f32 %v270_v21, %v293_v46  ;;  %808 = vmatprep.mubr.msk.f32.mxu0 %vm272_vm2, %v872_v45  ;;  %v327_v48 = vsel %vm272_vm2, %v872_v45, 0.0  ;;  %v772_v46 = vld [vmem:[%s1043_s2] ss:$0 sm:$0xff] }
 0x2ee   :  { %328 = vadd.xlane.f32.xlu1 %v327_v48 }
 0x2ef   :  { %v317_v49 = vmul.f32 1.442695, %v303_v47 }
 0x2f0   :  { %v874_v50 = vpop.eup %873  ;;  %v864_v51 = vpop.permute.xlu1 %863 }
 0x2f1   :  { %v296_v52 = vpop.xlane.xlu0 %295  ;;  %879 = vpow2.f32 %v317_v49  ;;  %v866_v53 = vunpack.i.h.bf16 %v864_v51  ;;  %v865_v54 = vunpack.i.l.bf16 %v864_v51  ;;  %809 = vmatmul.mubr.msk.f32.vlgmr.msra.gmra.mrb[2].mxu0 %vm272_vm2, %v874_v50  ;;  %v330_v56 = vsel %vm272_vm2, %v874_v50, 0.0 }
 0x2f2   :  { %v304_v55 = vsub.f32 %v271_v24, %v296_v52  ;;  %331 = vadd.xlane.f32.xlu0 %v330_v56 }
 0x2f3   :  { %v876_v57 = vpop.eup %875  ;;  %v837_v58 = vpack.c.bf16 %v866_v53, %v865_v54 }
 0x2f4   :  { %v319_v59 = vmul.f32 1.442695, %v304_v55  ;;  %815 = vmatprep.mubr.msk.f32.mxu1 %vm272_vm2, %v876_v57  ;;  %v333_v61 = vsel %vm272_vm2, %v876_v57, 0.0 }
 0x2f5   :  { %v859_v60 = vpop.permute.xlu0 %858  ;;  %838 = vmatprep.subr.bf16.mxu0 %v837_v58 }
 0x2f6   :  { %881 = vpow2.f32 %v319_v59  ;;  %v861_v62 = vunpack.i.h.bf16 %v859_v60  ;;  %v860_v63 = vunpack.i.l.bf16 %v859_v60  ;;  %840 = vmatpush3.bf16.msra.mxu0 %v837_v58  ;;  %334 = vadd.xlane.f32.xlu0 %v333_v61 }
 0x2f7   :  { %v878_v0 = vpop.eup %877 }
 0x2f8   :  { %v833_v1 = vpack.c.bf16 %v861_v62, %v860_v63  ;;  %v336_v2 = vsel %vm272_vm2, %v878_v0, 0.0 }
 0x2f9   :  { %337 = vadd.xlane.f32.xlu1 %v336_v2 }
 0x2fa   :  { %834 = vmatprep.subr.bf16.mxu1 %v833_v1 }
 0x2fb   :  { %836 = vmatpush3.bf16.msra.mxu1 %v833_v1  ;;  %v880_v3 = vpop.eup %879 }
 0x2fc   :  { %822 = vmatprep.mubr.msk.f32.mxu0 %vm272_vm2, %v880_v3  ;;  %v339_v4 = vsel %vm272_vm2, %v880_v3, 0.0 }
 0x2fd   :  { %340 = vadd.xlane.f32.xlu0 %v339_v4 }
 0x2fe   :  { %816 = vmatmul.mubr.msk.f32.vlgmr.msra.gmra.mrb[2].mxu1 %vm272_vm2, %v878_v0 }
 0x300   :  { %v882_v5 = vpop.eup %881 }
 0x301   :  { %823 = vmatmul.mubr.msk.f32.vlgmr.msra.gmra.mrb[4].mxu0 %vm272_vm2, %v882_v5  ;;  %v342_v8 = vsel %vm272_vm2, %v882_v5, 0.0  ;;  %322 = vadd.xlane.f32.xlu0 %v321_v7 }
 0x302   :  { %343 = vadd.xlane.f32.xlu1 %v342_v8 }
 0x306   :  { %325 = vadd.xlane.f32.xlu1 %v324_v9 }
 0x37b   :  { %v329_v11 = vpop.xlane.xlu1 %328 }
 0x37f   :  { %v332_v10 = vpop.xlane.xlu0 %331 }
 0x380   :  { %883 = vrcp.f32 %v332_v10 }
 0x381   :  { %885 = vrcp.f32 %v329_v11 }
 0x383   :  { %v335_v15 = vpop.xlane.xlu0 %334 }
 0x386   :  { %v338_v14 = vpop.xlane.xlu1 %337 }
 0x387   :  { %887 = vrcp.f32 %v338_v14 }
 0x388   :  { %889 = vrcp.f32 %v335_v15 }
 0x38a   :  { %v884_v16 = vpop.eup %883  ;;  %v341_v23 = vpop.xlane.xlu0 %340 }
 0x38b   :  { %v886_v18 = vpop.eup %885 }
 0x38e   :  { %v323_v37 = vpop.xlane.xlu0 %322 }
 0x38f   :  { %v344_v21 = vpop.xlane.xlu1 %343 }
 0x390   :  { %891 = vrcp.f32 %v344_v21 }
 0x391   :  { %893 = vrcp.f32 %v341_v23  ;;  %v888_v24 = vpop.eup %887 }
 0x392   :  { %v890_v26 = vpop.eup %889 }
 0x393   :  { %v326_v36 = vpop.xlane.xlu1 %325 }
 0x394   :  { %895 = vrcp.f32 %v326_v36 }
 0x395   :  { %897 = vrcp.f32 %v323_v37 }
 0x39a   :  { %v892_v30 = vpop.eup %891 }
 0x39b   :  { %v894_v32 = vpop.eup %893 }
 0x39e   :  { %v896_v40 = vpop.eup %895 }
 0x39f   :  { %v898_v41 = vpop.eup %897 }
 0x3bd   :  { %v803_v12 = vpop.f32.mrb[0].mxu1 }
 0x3be   :  { %v425_v13 = vpop.f32.mrb[1].mxu1  ;;  %v435_v42 = vmul.f32 %v896_v40, %v803_v12 }
 0x3bf   :  { %v434_v44 = vmul.f32 %v898_v41, %v425_v13 }
 0x3c4   :  { %v810_v17 = vpop.f32.mrb[2].mxu0 }
 0x3c5   :  { %v524_v19 = vmul.f32 %v884_v16, %v810_v17  ;;  %v514_v20 = vpop.f32.mrb[3].mxu0 }
 0x3c6   :  { %v523_v22 = vmul.f32 %v886_v18, %v514_v20 }
 0x3c7   :  { %707 = vrot.lane.b32.xlu1 %v524_v19, %s928_s26 }
 0x3c8   :  { %705 = vrot.lane.b32.xlu0 %v523_v22, %s928_s26 }
 0x3d1   :  { %v817_v25 = vpop.f32.mrb[2].mxu1 }
 0x3d2   :  { %v613_v27 = vmul.f32 %v888_v24, %v817_v25  ;;  %v603_v28 = vpop.f32.mrb[3].mxu1 }
 0x3d3   :  { %v612_v29 = vmul.f32 %v890_v26, %v603_v28 }
 0x3d4   :  { %v824_v31 = vpop.f32.mrb[4].mxu0  ;;  %715 = vrot.lane.b32.xlu0 %v613_v27, %s929_s27 }
 0x3d5   :  { %v702_v33 = vmul.f32 %v892_v30, %v824_v31  ;;  %v692_v34 = vpop.f32.mrb[5].mxu0  ;;  %713 = vrot.lane.b32.xlu1 %v612_v29, %s929_s27 }
 0x3d6   :  { %v701_v35 = vmul.f32 %v894_v32, %v692_v34 }
 0x3d8   :  { %723 = vrot.lane.b32.xlu0 %v702_v33, %s930_s28 }
 0x3d9   :  { %721 = vrot.lane.b32.xlu1 %v701_v35, %s930_s28 }
 0x439   :  { %v708_v39 = vpop.permute.xlu1 %707 }
 0x43a   :  { %v706_v38 = vpop.permute.xlu0 %705  ;;  %v728_v45 = vsel %vm23_vm0, %v435_v42, %v708_v39 }
 0x43b   :  { %v727_v47 = vsel %vm23_vm0, %v434_v44, %v706_v38 }
 0x446   :  { %v716_v6 = vpop.permute.xlu0 %715 }
 0x447   :  { %v714_v43 = vpop.permute.xlu1 %713  ;;  %v730_v48 = vsel %vm272_vm2, %v728_v45, %v716_v6 }
 0x448   :  { %v729_v50 = vsel %vm272_vm2, %v727_v47, %v714_v43 }
 0x44a   :  { %v724_v49 = vpop.permute.xlu0 %723 }
 0x44b   :  { %v733_v51 = vsel %vm731_vm4, %v730_v48, %v724_v49  ;;  %v722_v52 = vpop.permute.xlu1 %721 }
 0x44c   :  { %v742_v53 = vadd.f32 %v772_v46, %v733_v51  ;;  %v732_v54 = vsel %vm731_vm4, %v729_v50, %v722_v52 }
 0x44d   :  { %v741_v55 = vadd.f32 %v772_v46, %v732_v54 }
 0x44e   :  { %745 = vst.msk [vmem:[#allocation2 + $0x8] sm:$0xff] %vm743_vm5, %v742_v53 }
 0x44f   :  { %744 = vst.msk [vmem:[#allocation2] sm:$0xff] %vm743_vm5, %v741_v55 }
 0x450   :  { %910 = shalt.err (!%p907_p4)
}
 0x451   :  { %s911_s9 = scalar_lea.hbm %s1045_s4, 256 }
 0x452   :  { %p912_p5 = scmp.ne.s32.totalorder %s1045_s4, %s911_s9  ;;  %p915_p6 = scmp.lt.u32.totalorder %s911_s9, %s1045_s4 }
 0x454   :  { %p917_p7 = pnand %p915_p6, %p912_p5 }
 0x456   :  { %920 = shalt.err (!%p917_p7)
}
 0x457   :  { %s932_s14 = smov 128  }
 0x458   :  { %757 = dma.vmem_to_hbm [thread:$0]  %s752_s6, 256, %s1045_s4, [#allocation3], %s932_s14, %s932_s14, %s928_s26  }
 0x459   :  { %921 = dma.done.wait [#allocation3], 256  }
 0x45a   :  { %922 = vsyncadd [#allocation3], 4294967040 }
 0x45b   :  { %761 = vsyncpa [#allocation3], 1 }

</bundles_post_ra>
